<compile_context>
chip_gen: v7x
topology: tpu7x:2x2x1
jax: 0.10.0
libtpu: 0.0.40
codegen_flags: <defaults>
</compile_context>

<pallas_src>
import jax
import jax.numpy as jnp
import numpy as np
from jax.experimental import pallas as pl
from jax.experimental.pallas import tpu as pltpu

LEAKY_SLOPE = 0.01   # nn.LeakyReLU default
BN_EPS = 1e-5        # nn.BatchNorm1d default


def _leaky(z):
    # LeakyReLU(z) == max(z, a*z) for 0 < a < 1: mul+max (2 VPU ops).
    return jnp.maximum(z, LEAKY_SLOPE * z)


def _batchnorm_train(z, gamma, beta):
    # z: (M, F) with M = N*L (BatchNorm1d's reduction axes flattened).
    # Training-mode BN with biased batch statistics, single sweep
    # (sum + sum-of-squares; var = E[z^2] - mean^2), folded into one
    # per-channel affine: z * scale + shift.
    m = z.shape[0]
    inv_m = 1.0 / m
    s = jnp.sum(z, axis=0, keepdims=True)          # (1, F)
    ss = jnp.sum(z * z, axis=0, keepdims=True)     # (1, F)
    mean = s * inv_m
    var = ss * inv_m - mean * mean
    scale = gamma * jax.lax.rsqrt(var + BN_EPS)    # (1, F)  -> EUP rsqrt
    shift = beta - mean * scale                    # (1, F)
    return z * scale + shift


def basic_block_kernel(x_ref, w1_ref, w2_ref, bn_ref, o_ref):
    # x_ref : (N, L, C)   input, NLC layout
    # w1_ref: (K*C, F)    conv1 weight, taps folded into the contraction dim
    # w2_ref: (K*F, F)    conv2 weight, taps folded
    # bn_ref: (4, F)      rows = [gamma1, beta1, gamma2, beta2]
    # o_ref : (N, L2, F)  output, NLF layout
    x = x_ref[...]
    N, L, C = x.shape
    F = w1_ref.shape[1]
    K = w1_ref.shape[0] // C
    L1 = L - K + 1
    L2 = L1 - K + 1

    bn = bn_ref[...]
    g1, be1 = bn[0:1, :], bn[1:2, :]
    g2, be2 = bn[2:3, :], bn[3:4, :]

    # ---- conv1: fold the K taps into ONE MXU matmul (im2col on lane axis) ----
    c1 = jnp.concatenate([x[:, k:k + L1, :] for k in range(K)], axis=-1)  # (N,L1,K*C)
    h1 = jnp.dot(c1.reshape(N * L1, K * C), w1_ref[...],
                 preferred_element_type=jnp.float32)                      # (N*L1, F)
    # conv bias omitted: exactly cancelled by the BN mean subtraction below.
    h1 = _leaky(_batchnorm_train(h1, g1, be1)).reshape(N, L1, F)

    # ---- conv2 ----
    c2 = jnp.concatenate([h1[:, k:k + L2, :] for k in range(K)], axis=-1)  # (N,L2,K*F)
    h2 = jnp.dot(c2.reshape(N * L2, K * F), w2_ref[...],
                 preferred_element_type=jnp.float32)                       # (N*L2, F)
    h2 = _batchnorm_train(h2, g2, be2)

    # ---- center-crop residual (torch.narrow) + add + activation ----
    start = (L - L2) // 2
    res = x[:, start:start + L2, :].reshape(N * L2, C)   # C == F in this block
    y = _leaky(h2 + res)

    o_ref[...] = y.reshape(N, L2, F).astype(o_ref.dtype)


def basic_block_forward(x, params):
    """x: (N, C, L) float32.  params are PyTorch-shaped.  Returns (N, F, L2)."""
    w1, b1, g1, be1, w2, b2, g2, be2 = params
    del b1, b2  # per-channel conv bias is a no-op under training-mode BN
    N, C, L = x.shape
    F, _, K = w1.shape
    assert C == F, "residual add in BasicBlock requires in_channels == features"
    L2 = L - 2 * (K - 1)

    # Layout plumbing only (no compute): NCL -> NLC, and fold the conv taps
    # into the contraction dim so the kernel does one matmul per conv.
    x_nlc = jnp.transpose(x, (0, 2, 1))                                   # (N, L, C)
    w1_f = jnp.transpose(w1, (2, 1, 0)).reshape(K * C, F).astype(jnp.float32)
    w2_f = jnp.transpose(w2, (2, 1, 0)).reshape(K * F, F).astype(jnp.float32)
    bn_pack = jnp.stack([g1, be1, g2, be2]).astype(jnp.float32)           # (4, F)

    # TODO(synk): for inputs that do not fit VMEM, add a grid over (N, L)
    # tiles with cross-tile BatchNorm statistics (sum / sum-of-squares
    # accumulators + a second normalization pass) and dimension_semantics;
    # at these block sizes a single invocation is both correct and fastest.
    y_nlf = pl.pallas_call(
        basic_block_kernel,
        out_shape=jax.ShapeDtypeStruct((N, L2, F), x.dtype),
        in_specs=[pl.BlockSpec(memory_space=pltpu.MemorySpace.VMEM)] * 4,
        out_specs=pl.BlockSpec(memory_space=pltpu.MemorySpace.VMEM),
    )(x_nlc, w1_f, w2_f, bn_pack)

    return jnp.transpose(y_nlf, (0, 2, 1))                                # (N, F, L2)


def ref_forward(x, params):
    """Pure-JAX reference matching the PyTorch forward (training-mode BN),
    INCLUDING the conv biases (to validate that dropping them is exact)."""
    w1, b1, g1, be1, w2, b2, g2, be2 = params

    def conv1d(z, w, b):
        y = jax.lax.conv_general_dilated(z, w, (1,), 'VALID',
                                         dimension_numbers=('NCH', 'OIH', 'NCH'))
        return y + b.reshape(1, -1, 1)

    def bn(z, gamma, beta):
        mean = jnp.mean(z, axis=(0, 2), keepdims=True)
        var = jnp.mean(jnp.square(z - mean), axis=(0, 2), keepdims=True)
        return ((z - mean) / jnp.sqrt(var + BN_EPS)) * gamma.reshape(1, -1, 1) \
               + beta.reshape(1, -1, 1)

    def leaky(z):
        return jnp.where(z >= 0, z, LEAKY_SLOPE * z)

    out = leaky(bn(conv1d(x, w1, b1), g1, be1))
    out = bn(conv1d(out, w2, b2), g2, be2)
    L2 = out.shape[-1]
    start = (x.shape[-1] - L2) // 2
    xc = jax.lax.dynamic_slice_in_dim(x, start, L2, axis=2)
    return leaky(out + xc)


if __name__ == "__main__":
    # Small shapes consistent with the module: batch=2, in_channels=features=4,
    # kernel_size=3, length=16  ->  output length 12.
    N, C, F, K, L = 2, 4, 4, 3, 16

    key = jax.random.PRNGKey(0)
    ks = jax.random.split(key, 9)
    w1 = 0.3 * jax.random.normal(ks[0], (F, C, K), jnp.float32)    # Conv1d weight
    b1 = 0.1 * jax.random.normal(ks[1], (F,), jnp.float32)         # Conv1d bias
    g1 = 1.0 + 0.1 * jax.random.normal(ks[2], (F,), jnp.float32)   # BN1 gamma
    be1 = 0.1 * jax.random.normal(ks[3], (F,), jnp.float32)        # BN1 beta
    w2 = 0.3 * jax.random.normal(ks[4], (F, F, K), jnp.float32)
    b2 = 0.1 * jax.random.normal(ks[5], (F,), jnp.float32)
    g2 = 1.0 + 0.1 * jax.random.normal(ks[6], (F,), jnp.float32)
    be2 = 0.1 * jax.random.normal(ks[7], (F,), jnp.float32)
    x = jax.random.normal(ks[8], (N, C, L), jnp.float32)

    params = (w1, b1, g1, be1, w2, b2, g2, be2)

    y = basic_block_forward(x, params)
    jax.block_until_ready(y)

    y_ref = ref_forward(x, params)
    assert y.shape == (N, F, L - 2 * (K - 1)), y.shape
    np.testing.assert_allclose(np.asarray(y), np.asarray(y_ref), rtol=1e-4, atol=1e-4)

    print("KERNEL_OK")
</pallas_src>

<mosaic_0001>
module attributes {stable_mosaic.version = 11 : i64} {
  func.func @basic_block_kernel(%arg0: memref<2x16x4xf32, #tpu.memory_space<vmem>>, %arg1: memref<12x4xf32, #tpu.memory_space<vmem>>, %arg2: memref<12x4xf32, #tpu.memory_space<vmem>>, %arg3: memref<4x4xf32, #tpu.memory_space<vmem>>, %arg4: memref<2x12x4xf32, #tpu.memory_space<vmem>>) attributes {dimension_semantics = [], scalar_prefetch = 0 : i64, scratch_operands = 0 : i64, tpu.core_type = #tpu.core_type<tc>} {
    %c0 = arith.constant 0 : index
    %c0_0 = arith.constant 0 : index
    %c0_1 = arith.constant 0 : index
    %0 = vector.load %arg0[%c0, %c0_0, %c0_1] : memref<2x16x4xf32, #tpu.memory_space<vmem>>, vector<2x16x4xf32>
    %c0_2 = arith.constant 0 : index
    %c0_3 = arith.constant 0 : index
    %1 = vector.load %arg3[%c0_2, %c0_3] : memref<4x4xf32, #tpu.memory_space<vmem>>, vector<4x4xf32>
    %2 = vector.extract_strided_slice %1 {offsets = [0, 0], sizes = [1, 4], strides = [1, 1]} : vector<4x4xf32> to vector<1x4xf32>
    %3 = vector.extract_strided_slice %1 {offsets = [1, 0], sizes = [1, 4], strides = [1, 1]} : vector<4x4xf32> to vector<1x4xf32>
    %4 = vector.extract_strided_slice %1 {offsets = [2, 0], sizes = [1, 4], strides = [1, 1]} : vector<4x4xf32> to vector<1x4xf32>
    %5 = vector.extract_strided_slice %1 {offsets = [3, 0], sizes = [1, 4], strides = [1, 1]} : vector<4x4xf32> to vector<1x4xf32>
    %6 = vector.extract_strided_slice %0 {offsets = [0, 0, 0], sizes = [2, 14, 4], strides = [1, 1, 1]} : vector<2x16x4xf32> to vector<2x14x4xf32>
    %7 = vector.extract_strided_slice %0 {offsets = [0, 1, 0], sizes = [2, 14, 4], strides = [1, 1, 1]} : vector<2x16x4xf32> to vector<2x14x4xf32>
    %8 = vector.extract_strided_slice %0 {offsets = [0, 2, 0], sizes = [2, 14, 4], strides = [1, 1, 1]} : vector<2x16x4xf32> to vector<2x14x4xf32>
    %9 = tpu.concatenate %6, %7, %8 in 2 : vector<2x14x4xf32>, vector<2x14x4xf32>, vector<2x14x4xf32> -> vector<2x14x12xf32>
    %10 = vector.shape_cast %9 : vector<2x14x12xf32> to vector<28x12xf32>
    %c0_4 = arith.constant 0 : index
    %c0_5 = arith.constant 0 : index
    %11 = vector.load %arg1[%c0_4, %c0_5] : memref<12x4xf32, #tpu.memory_space<vmem>>, vector<12x4xf32>
    %cst = arith.constant dense<0.000000e+00> : vector<28x4xf32>
    %12 = tpu.matmul %10, %11, %cst {dimension_numbers = #tpu.dot_dimension_numbers<[1], [0], [0], [1], [0, 0, 1, 1], [], []>} : vector<28x12xf32>, vector<12x4xf32>, vector<28x4xf32> -> vector<28x4xf32>
    %cst_6 = arith.constant dense<0.000000e+00> : vector<4xf32>
    %13 = vector.multi_reduction <add>, %12, %cst_6 [0] : vector<28x4xf32> to vector<4xf32>
    %14 = vector.shape_cast %13 : vector<4xf32> to vector<1x4xf32>
    %15 = arith.mulf %12, %12 : vector<28x4xf32>
    %cst_7 = arith.constant dense<0.000000e+00> : vector<4xf32>
    %16 = vector.multi_reduction <add>, %15, %cst_7 [0] : vector<28x4xf32> to vector<4xf32>
    %17 = vector.shape_cast %16 : vector<4xf32> to vector<1x4xf32>
    %cst_8 = arith.constant 0.0357142873 : f32
    %18 = vector.broadcast %cst_8 : f32 to vector<1x4xf32>
    %19 = arith.mulf %14, %18 : vector<1x4xf32>
    %cst_9 = arith.constant 0.0357142873 : f32
    %20 = vector.broadcast %cst_9 : f32 to vector<1x4xf32>
    %21 = arith.mulf %17, %20 : vector<1x4xf32>
    %22 = arith.mulf %19, %19 : vector<1x4xf32>
    %23 = arith.subf %21, %22 : vector<1x4xf32>
    %cst_10 = arith.constant 9.99999974E-6 : f32
    %24 = vector.broadcast %cst_10 : f32 to vector<1x4xf32>
    %25 = arith.addf %23, %24 : vector<1x4xf32>
    %26 = math.rsqrt %25 : vector<1x4xf32>
    %27 = arith.mulf %2, %26 : vector<1x4xf32>
    %28 = arith.mulf %19, %27 : vector<1x4xf32>
    %29 = arith.subf %3, %28 : vector<1x4xf32>
    %30 = vector.broadcast %27 : vector<1x4xf32> to vector<28x4xf32>
    %31 = arith.mulf %12, %30 : vector<28x4xf32>
    %32 = vector.broadcast %29 : vector<1x4xf32> to vector<28x4xf32>
    %33 = arith.addf %31, %32 : vector<28x4xf32>
    %cst_11 = arith.constant 0.00999999977 : f32
    %34 = vector.broadcast %cst_11 : f32 to vector<28x4xf32>
    %35 = arith.mulf %34, %33 : vector<28x4xf32>
    %36 = arith.maximumf %33, %35 : vector<28x4xf32>
    %37 = vector.shape_cast %36 : vector<28x4xf32> to vector<2x14x4xf32>
    %38 = vector.extract_strided_slice %37 {offsets = [0, 0, 0], sizes = [2, 12, 4], strides = [1, 1, 1]} : vector<2x14x4xf32> to vector<2x12x4xf32>
    %39 = vector.extract_strided_slice %37 {offsets = [0, 1, 0], sizes = [2, 12, 4], strides = [1, 1, 1]} : vector<2x14x4xf32> to vector<2x12x4xf32>
    %40 = vector.extract_strided_slice %37 {offsets = [0, 2, 0], sizes = [2, 12, 4], strides = [1, 1, 1]} : vector<2x14x4xf32> to vector<2x12x4xf32>
    %41 = tpu.concatenate %38, %39, %40 in 2 : vector<2x12x4xf32>, vector<2x12x4xf32>, vector<2x12x4xf32> -> vector<2x12x12xf32>
    %42 = vector.shape_cast %41 : vector<2x12x12xf32> to vector<24x12xf32>
    %c0_12 = arith.constant 0 : index
    %c0_13 = arith.constant 0 : index
    %43 = vector.load %arg2[%c0_12, %c0_13] : memref<12x4xf32, #tpu.memory_space<vmem>>, vector<12x4xf32>
    %cst_14 = arith.constant dense<0.000000e+00> : vector<24x4xf32>
    %44 = tpu.matmul %42, %43, %cst_14 {dimension_numbers = #tpu.dot_dimension_numbers<[1], [0], [0], [1], [0, 0, 1, 1], [], []>} : vector<24x12xf32>, vector<12x4xf32>, vector<24x4xf32> -> vector<24x4xf32>
    %cst_15 = arith.constant dense<0.000000e+00> : vector<4xf32>
    %45 = vector.multi_reduction <add>, %44, %cst_15 [0] : vector<24x4xf32> to vector<4xf32>
    %46 = vector.shape_cast %45 : vector<4xf32> to vector<1x4xf32>
    %47 = arith.mulf %44, %44 : vector<24x4xf32>
    %cst_16 = arith.constant dense<0.000000e+00> : vector<4xf32>
    %48 = vector.multi_reduction <add>, %47, %cst_16 [0] : vector<24x4xf32> to vector<4xf32>
    %49 = vector.shape_cast %48 : vector<4xf32> to vector<1x4xf32>
    %cst_17 = arith.constant 0.0416666679 : f32
    %50 = vector.broadcast %cst_17 : f32 to vector<1x4xf32>
    %51 = arith.mulf %46, %50 : vector<1x4xf32>
    %cst_18 = arith.constant 0.0416666679 : f32
    %52 = vector.broadcast %cst_18 : f32 to vector<1x4xf32>
    %53 = arith.mulf %49, %52 : vector<1x4xf32>
    %54 = arith.mulf %51, %51 : vector<1x4xf32>
    %55 = arith.subf %53, %54 : vector<1x4xf32>
    %cst_19 = arith.constant 9.99999974E-6 : f32
    %56 = vector.broadcast %cst_19 : f32 to vector<1x4xf32>
    %57 = arith.addf %55, %56 : vector<1x4xf32>
    %58 = math.rsqrt %57 : vector<1x4xf32>
    %59 = arith.mulf %4, %58 : vector<1x4xf32>
    %60 = arith.mulf %51, %59 : vector<1x4xf32>
    %61 = arith.subf %5, %60 : vector<1x4xf32>
    %62 = vector.broadcast %59 : vector<1x4xf32> to vector<24x4xf32>
    %63 = arith.mulf %44, %62 : vector<24x4xf32>
    %64 = vector.broadcast %61 : vector<1x4xf32> to vector<24x4xf32>
    %65 = arith.addf %63, %64 : vector<24x4xf32>
    %66 = vector.extract_strided_slice %0 {offsets = [0, 2, 0], sizes = [2, 12, 4], strides = [1, 1, 1]} : vector<2x16x4xf32> to vector<2x12x4xf32>
    %67 = vector.shape_cast %66 : vector<2x12x4xf32> to vector<24x4xf32>
    %68 = arith.addf %65, %67 : vector<24x4xf32>
    %cst_20 = arith.constant 0.00999999977 : f32
    %69 = vector.broadcast %cst_20 : f32 to vector<24x4xf32>
    %70 = arith.mulf %69, %68 : vector<24x4xf32>
    %71 = arith.maximumf %68, %70 : vector<24x4xf32>
    %72 = vector.shape_cast %71 : vector<24x4xf32> to vector<2x12x4xf32>
    %c0_21 = arith.constant 0 : index
    %c0_22 = arith.constant 0 : index
    %c0_23 = arith.constant 0 : index
    %73 = vector.load %arg4[%c0_21, %c0_22, %c0_23] : memref<2x12x4xf32, #tpu.memory_space<vmem>>, vector<2x12x4xf32>
    tpu.vector_store %arg4[%c0_21, %c0_22, %c0_23], %72 {strides = array<i32>} : memref<2x12x4xf32, #tpu.memory_space<vmem>>, vector<2x12x4xf32>,
    return
  }
}

</mosaic_0001>

<bundles_post_ra>
// kernel: tpu_custom_call.1
= control target key start
LH: loop header
LB: loop body
LE: loop exit
PB: predicated region body
PF: predicated region fallthrough
CT: control target
= control target key end

     0   :  { %vm26_vm0 = vcmask 1046528   ;;  %s873_s23 = smov 4   ;;  %vm45_vm1 = vcmask 1045504   ;;  %vm214_vm2 = vcmask 1043456   ;;  %s874_s27 = smov 8   ;;  %vm875_vm3 = vmmov 1   ;;  %s1135_s0 = inlined_call_operand.vmem [shape: f32[2,16,4], index: 0, kind: input, shape index: {}]   ;;  %s1136_s1 = inlined_call_operand.vmem [shape: f32[12,4], index: 1, kind: input, shape index: {}]   ;;  %s1137_s3 = inlined_call_operand.vmem [shape: f32[4,4], index: 3, kind: input, shape index: {}]   ;;  %s1138_s2 = inlined_call_operand.vmem [shape: f32[12,4], index: 2, kind: input, shape index: {}]   ;;  %s1139_s4 = inlined_call_operand.vmem [shape: f32[2,12,4], index: 4, kind: output, shape index: {}]  }
   0x1   :  { %v908_v0 = vld [vmem:[%s1135_s0 + $0x8] sm:$0xff]  ;;  %v913_v1 = vld [vmem:[%s1135_s0] sm:$0xff]  ;;  %v920_v4 = vld [vmem:[%s1135_s0 + $0x10] sm:$0xff]  ;;  %v876_v20 = vmov 1983009808   ;;  %v82_v22 = vlaneseq  ;;  %vm64_vm5 = vcmask 31744  }
   0x2   :  { %v28_v2 = vrot.slane %v908_v0, 1  ;;  %v27_v3 = vrot.slane %v913_v1, 1  ;;  %v925_v5 = vld [vmem:[%s1135_s0 + $0x18] sm:$0xff]  ;;  %v30_v6 = vrot.slane %v920_v4, 1  ;;  %v46_v10 = vrot.slane %v913_v1, 2  ;;  %v144_v12 = vld [vmem:[%s1136_s1] sm:$0xff]  ;;  %vm945_vm4 = vmpackc.low %vm214_vm2, %vm875_vm3 }
   0x3   :  { %v31_v7 = vrot.slane %v925_v5, 1  ;;  %v47_v11 = vrot.slane %v908_v0, 2  ;;  %v145_v13 = vld [vmem:[%s1136_s1 + $0x8] sm:$0xf]  ;;  %v49_v14 = vrot.slane %v920_v4, 2  ;;  %v50_v15 = vrot.slane %v925_v5, 2 }
   0x4   :  { %35 = vrot.lane.b32.xlu1 %v28_v2, %s873_s23  ;;  %v29_v8 = vsel %vm26_vm0, %v27_v3, %v28_v2  ;;  %v848_v17 = vpack.c.bf16 %v145_v13, %v144_v12  ;;  %v80_v21 = vunpack.c.l.s4 %v876_v20  ;;  %v957_v24 = vshrl.u32 %v82_v22, 7 }
   0x5   :  { %33 = vrot.lane.b32.xlu0 %v29_v8, %s873_s23  ;;  %v32_v9 = vsel %vm26_vm0, %v30_v6, %v31_v7  ;;  %v48_v16 = vsel %vm45_vm1, %v46_v10, %v47_v11  ;;  %v51_v18 = vsel %vm45_vm1, %v49_v14, %v50_v15  ;;  %vm69_vm6 = vcmask 64512  }
   0x6   :  { %850 = vmatprep.subr.msk.bf16.mxu0 %vm945_vm4, %v848_v17  ;;  %v81_v23 = vunpack.c.0.s8 %v80_v21  ;;  %vm205_vm7 = vcmask 97280   ;;  %vm308_vm8 = vcmask 27648   ;;  %vm878_vm9 = vmmov 0  }
   0x7   :  { %853 = vmatpush3.bf16.msk.msra.mxu0 %vm945_vm4, %v848_v17  ;;  %vm746_vm10 = vcmask 1041408   ;;  %vm747_vm11 = vcmask 1045508  }
   0x8   :  { %37 = vrot.lane.b32.xlu1 %v32_v9, %s873_s23  ;;  %v960_v27 = vsub.s32 %v81_v23, %v957_v24  ;;  %vm1097_vm12 = vmor %vm746_vm10, %vm747_vm11 }
   0x9   :  { %52 = vrot.lane.b32.xlu0 %v48_v16, %s874_s27 }
   0xc   :  { %56 = vrot.lane.b32.xlu1 %v51_v18, %s874_s27 }
   0xd   :  { %54 = vrot.lane.b32.xlu0 %v47_v11, %s874_s27 }
  0x10   :  { %58 = vrot.lane.b32.xlu1 %v50_v15, %s874_s27 }
  0x11   :  { %39 = vrot.lane.b32.xlu0 %v31_v7, %s873_s23 }
  0x76   :  { %v36_v25 = vpop.permute.xlu1 %35 }
  0x77   :  { %v34_v26 = vpop.permute.xlu0 %33  ;;  %v66_v36 = vsel %vm64_vm5, %v908_v0, %v36_v25 }
  0x78   :  { %v65_v29 = vsel %vm64_vm5, %v913_v1, %v34_v26 }
  0x7a   :  { %v38_v28 = vpop.permute.xlu1 %37 }
  0x7b   :  { %v53_v30 = vpop.permute.xlu0 %52  ;;  %v67_v31 = vsel %vm64_vm5, %v920_v4, %v38_v28 }
  0x7c   :  { %v70_v32 = vsel %vm69_vm6, %v65_v29, %v53_v30 }
  0x7d   :  { %v78_v33 = vcombine.high %v70_v32, %v70_v32  ;;  %v85_v34 = vrot.slane %v70_v32, %v960_v27 }
  0x7e   :  { %v57_v35 = vpop.permute.xlu1 %56 }
  0x7f   :  { %v92_v37 = vrot.slane %v78_v33, %v960_v27  ;;  %v93_v38 = vcombine.high %v85_v34, %v85_v34  ;;  %v72_v39 = vsel %vm69_vm6, %v67_v31, %v57_v35  ;;  %v55_v40 = vpop.permute.xlu0 %54 }
  0x80   :  { %v111_v41 = vcombine.high %v72_v39, %v72_v39  ;;  %v118_v42 = vrot.slane %v72_v39, %v960_v27  ;;  %v71_v43 = vsel %vm69_vm6, %v66_v36, %v55_v40 }
  0x81   :  { %v94_v44 = vcombine.high %v92_v37, %v92_v37  ;;  %v146_v45 = vcombine.low %v85_v34, %v93_v38  ;;  %v95_v46 = vcombine.high %v71_v43, %v71_v43  ;;  %v102_v47 = vrot.slane %v71_v43, %v960_v27 }
  0x82   :  { %v125_v48 = vrot.slane %v111_v41, %v960_v27  ;;  %v126_v49 = vcombine.high %v118_v42, %v118_v42  ;;  %v59_v50 = vpop.permute.xlu1 %58 }
  0x83   :  { %v109_v51 = vrot.slane %v95_v46, %v960_v27  ;;  %v110_v52 = vcombine.high %v102_v47, %v102_v47  ;;  %v40_v53 = vpop.permute.xlu0 %39  ;;  %v147_v54 = vcombine.low %v92_v37, %v94_v44  ;;  %v154_v56 = vrot.slane %v146_v45, %v960_v27 }
  0x84   :  { %v68_v55 = vsel %vm64_vm5, %v925_v5, %v40_v53  ;;  %v180_v61 = vcombine.low %v126_v49, %v125_v48  ;;  %v127_v62 = vcombine.high %v125_v48, %v125_v48 }
  0x85   :  { %v163_v57 = vcombine.low %v102_v47, %v110_v52  ;;  %v164_v58 = vcombine.low %v109_v51, %v118_v42  ;;  %v73_v59 = vsel %vm69_vm6, %v68_v55, %v59_v50  ;;  %v161_v60 = vrot.slane %v147_v54, %v960_v27 }
  0x86   :  { %v128_v63 = vcombine.high %v73_v59, %v73_v59  ;;  %v135_v2 = vrot.slane %v73_v59, %v960_v27  ;;  %v188_v12 = vrot.slane %v180_v61, %v960_v27  ;;  %v1004_v59 = vld [vmem:[%s1137_s3] sm:$0xf] }
  0x87   :  { %v171_v3 = vrot.slane %v163_v57, %v960_v27  ;;  %v178_v6 = vrot.slane %v164_v58, %v960_v27  ;;  %v162_v7 = vcombine.low %v154_v56, %v161_v60  ;;  %v348_v60 = vsub.s32 0, %v957_v24 }
  0x88   :  { %v142_v8 = vrot.slane %v128_v63, %v960_v27  ;;  %v143_v9 = vcombine.high %v135_v2, %v135_v2  ;;  %v181_v10 = vcombine.low %v127_v62, %v135_v2 }
  0x89   :  { %829 = vmatprep.mubr.msk.f32.mxu0 %vm205_vm7, %v162_v7  ;;  %v179_v11 = vcombine.low %v171_v3, %v178_v6  ;;  %v356_v3 = vsub.s32 1, %v957_v24 }
  0x8a   :  { %v195_v13 = vrot.slane %v181_v10, %v960_v27  ;;  %v197_v14 = vcombine.low %v143_v9, %v142_v8 }
  0x8b   :  { %830 = vmatmul.mubr.msk.f32.vlgmr.msra.gmra.mrb[0].mxu0 %vm205_vm7, %v179_v11 }
  0x8c   :  { %v196_v15 = vcombine.low %v188_v12, %v195_v13  ;;  %v204_v16 = vrot.slane %v197_v14, %v960_v27 }
  0x8e   :  { %832 = vmatprep.mubr.msk.f32.mxu0 %vm205_vm7, %v196_v15 }
  0x8f   :  { %833 = vmatmul.mubr.msk.f32.gmra.mrb[2].mxu0 %vm205_vm7, %v204_v16 }
 0x15e   :  { %v831_v17 = vpop.f32.mrb[0].mxu0 }
 0x15f   :  { %v304_v18 = vsel %vm64_vm5, %v831_v17, 0.0  ;;  %v318_v20 = vmul.f32 %v831_v17, %v831_v17  ;;  %v284_v21 = vpop.f32.mrb[1].mxu0 }
 0x160   :  { %v303_v22 = vsel %vm64_vm5, %v284_v21, 0.0  ;;  %v317_v23 = vmul.f32 %v284_v21, %v284_v21 }
 0x161   :  { %v322_v25 = vsel %vm64_vm5, %v318_v20, 0.0  ;;  %v305_v26 = vadd.f32 %v304_v18, %v303_v22 }
 0x162   :  { %v321_v28 = vsel %vm64_vm5, %v317_v23, 0.0  ;;  %v834_v29 = vpop.f32.mrb[2].mxu0 }
 0x163   :  { %v323_v30 = vadd.f32 %v322_v25, %v321_v28  ;;  %v294_v31 = vpop.f32.mrb[3].mxu0  ;;  %v320_v32 = vmul.f32 %v834_v29, %v834_v29  ;;  %v309_v36 = vsel %vm308_vm8, %v834_v29, 0.0 }
 0x164   :  { %v306_v33 = vsel %vm64_vm5, %v294_v31, 0.0  ;;  %v319_v34 = vmul.f32 %v294_v31, %v294_v31 }
 0x165   :  { %v307_v35 = vadd.f32 %v306_v33, %v305_v26  ;;  %v326_v40 = vsel %vm308_vm8, %v320_v32, 0.0 }
 0x166   :  { %v324_v37 = vsel %vm64_vm5, %v319_v34, 0.0 }
 0x167   :  { %v310_v38 = vadd.f32 %v309_v36, %v307_v35  ;;  %v325_v39 = vadd.f32 %v324_v37, %v323_v30 }
 0x169   :  { %v311_v41 = vrot.slane %v310_v38, 4  ;;  %v327_v42 = vadd.f32 %v326_v40, %v325_v39 }
 0x16b   :  { %v312_v43 = vadd.f32 %v311_v41, %v310_v38  ;;  %v328_v44 = vrot.slane %v327_v42, 4 }
 0x16d   :  { %v313_v45 = vrot.slane %v312_v43, 2  ;;  %v329_v46 = vadd.f32 %v328_v44, %v327_v42 }
 0x16f   :  { %v314_v47 = vadd.f32 %v313_v45, %v312_v43  ;;  %v330_v48 = vrot.slane %v329_v46, 2 }
 0x171   :  { %v315_v49 = vrot.slane %v314_v47, 1  ;;  %v331_v50 = vadd.f32 %v330_v48, %v329_v46 }
 0x173   :  { %v316_v51 = vadd.f32 %v315_v49, %v314_v47  ;;  %v332_v52 = vrot.slane %v331_v50, 1 }
 0x175   :  { %v333_v53 = vadd.f32 %v332_v52, %v331_v50  ;;  %v334_v54 = vmul.f32 0.035714287, %v316_v51 }
 0x177   :  { %v335_v55 = vmul.f32 0.035714287, %v333_v53  ;;  %v336_v56 = vmul.f32 %v334_v54, %v334_v54 }
 0x179   :  { %v337_v57 = vsub.f32 %v335_v55, %v336_v56 }
 0x17b   :  { %v338_v58 = vadd.f32 1e-05, %v337_v57 }
 0x17d   :  { %869 = vrsqrt.f32 %v338_v58 }
 0x187   :  { %v870_v61 = vpop.eup %869 }
 0x188   :  { %v340_v62 = vmul.f32 %v870_v61, %v1004_v59 }
 0x18a   :  { %v341_v63 = vmul.f32 %v340_v62, %v334_v54  ;;  %v349_v2 = vrot.slane %v340_v62, %v348_v60 }
 0x18c   :  { %v343_v6 = vrot.slane %v341_v63, 7  ;;  %v350_v7 = vmul.f32 %v349_v2, %v284_v21  ;;  %v351_v8 = vmul.f32 %v831_v17, %v349_v2  ;;  %v352_v9 = vmul.f32 %v349_v2, %v294_v31 }
 0x18d   :  { %v353_v10 = vmul.f32 %v834_v29, %v349_v2 }
 0x18e   :  { %v345_v11 = vsub.f32 %v1004_v59, %v343_v6 }
 0x190   :  { %v357_v12 = vrot.slane %v345_v11, %v356_v3 }
 0x192   :  { %v360_v13 = vadd.f32 %v357_v12, %v352_v9  ;;  %v358_v14 = vadd.f32 %v357_v12, %v350_v7  ;;  %v359_v15 = vadd.f32 %v357_v12, %v351_v8  ;;  %v361_v16 = vadd.f32 %v357_v12, %v353_v10  ;;  %v597_v8 = vld [vmem:[%s1138_s2] sm:$0xff]  ;;  %v598_v9 = vld [vmem:[%s1138_s2 + $0x8] sm:$0xf] }
 0x194   :  { %v364_v18 = vmul.f32 0.01, %v360_v13  ;;  %v362_v20 = vmul.f32 0.01, %v358_v14  ;;  %v363_v22 = vmul.f32 0.01, %v359_v15 }
 0x195   :  { %v365_v23 = vmul.f32 0.01, %v361_v16 }
 0x196   :  { %v368_v25 = vmax.f32 %v360_v13, %v364_v18  ;;  %v366_v26 = vmax.f32 %v358_v14, %v362_v20  ;;  %v367_v28 = vmax.f32 %v359_v15, %v363_v22  ;;  %v877_v18 = vmov 0.0|0.0  }
 0x197   :  { %v369_v30 = vmax.f32 %v361_v16, %v365_v23  ;;  %854 = vmatprep.subr.bf16.mxu1 %v877_v18  ;;  %v855_v20 = vpack.c.bf16 %v598_v9, %v597_v8 }
 0x198   :  { %v408_v32 = vcombine.high %v368_v25, %v368_v25  ;;  %v415_v17 = vrot.slane %v368_v25, %v960_v27  ;;  %v374_v21 = vcombine.high %v366_v26, %v366_v26  ;;  %v381_v29 = vrot.slane %v366_v26, %v960_v27 }
 0x199   :  { %v398_v31 = vrot.slane %v367_v28, %v960_v27  ;;  %v391_v33 = vcombine.high %v367_v28, %v367_v28  ;;  %v1014_v34 = vrot.slane %v369_v30, %v960_v27  ;;  %857 = vmatpush3.bf16.msk.msra.mxu1 %vm945_vm4, %v855_v20  ;;  %v879_v28 = vmov 0.0  }
 0x19a   :  { %v422_v35 = vrot.slane %v408_v32, %v960_v27  ;;  %v423_v36 = vcombine.high %v415_v17, %v415_v17  ;;  %v388_v37 = vrot.slane %v374_v21, %v960_v27  ;;  %v389_v38 = vcombine.high %v381_v29, %v381_v29  ;;  %839 = vmatprep.mubr.msk.f32.mxu1 %vm878_vm9, %v879_v28 }
 0x19b   :  { %v405_v39 = vrot.slane %v391_v33, %v960_v27  ;;  %v406_v40 = vcombine.high %v398_v31, %v398_v31  ;;  %v432_v47 = vcombine.high %v1014_v34, %v1014_v34 }
 0x19c   :  { %v390_v41 = vcombine.high %v388_v37, %v388_v37  ;;  %v433_v42 = vcombine.low %v381_v29, %v389_v38  ;;  %v521_v43 = vcombine.low %v389_v38, %v388_v37  ;;  %v424_v44 = vcombine.high %v422_v35, %v422_v35 }
 0x19d   :  { %v450_v45 = vcombine.low %v398_v31, %v406_v40  ;;  %v407_v46 = vcombine.high %v405_v39, %v405_v39  ;;  %v459_v48 = vcombine.low %v423_v36, %v422_v35  ;;  %v493_v51 = vrot.slane %v405_v39, %v960_v27 }
 0x19e   :  { %v522_v49 = vcombine.low %v390_v41, %v398_v31  ;;  %v434_v50 = vcombine.low %v388_v37, %v390_v41  ;;  %v529_v52 = vrot.slane %v521_v43, %v960_v27  ;;  %v475_v55 = vcombine.low %v424_v44, %v1014_v34 }
 0x19f   :  { %v457_v53 = vrot.slane %v450_v45, %v960_v27  ;;  %v458_v54 = vcombine.low %v407_v46, %v415_v17  ;;  %v441_v57 = vrot.slane %v433_v42, %v960_v27  ;;  %v473_v60 = vrot.slane %v459_v48, %v960_v27 }
 0x1a0   :  { %v536_v56 = vrot.slane %v522_v49, %v960_v27  ;;  %v448_v58 = vrot.slane %v434_v50, %v960_v27  ;;  %v482_v63 = vrot.slane %v475_v55, %v960_v27  ;;  %v501_v2 = vrot.slane %v432_v47, %v960_v27 }
 0x1a1   :  { %v494_v61 = vcombine.low %v457_v53, %v493_v51  ;;  %v466_v62 = vrot.slane %v458_v54, %v960_v27  ;;  %v547_v7 = vcombine.low %v422_v35, %v424_v44  ;;  %v546_v14 = vcombine.low %v415_v17, %v423_v36 }
 0x1a2   :  { %v537_v3 = vcombine.low %v529_v52, %v536_v56  ;;  %v449_v6 = vcombine.low %v441_v57, %v448_v58  ;;  %v502_v11 = vcombine.low %v482_v63, %v501_v2  ;;  %v538_v30 = vcombine.low %v406_v40, %v405_v39 }
 0x1a3   :  { %v474_v10 = vcombine.low %v466_v62, %v473_v60  ;;  %v504_v13 = vrot.slane %v494_v61, 1  ;;  %v561_v23 = vrot.slane %v547_v7, %v960_v27  ;;  %v554_v26 = vrot.slane %v546_v14, %v960_v27 }
 0x1a4   :  { %571 = vrot.lane.b32.xlu1 %v537_v3, %s874_s27  ;;  %v503_v12 = vrot.slane %v449_v6, 1  ;;  %v507_v16 = vrot.slane %v502_v11, 1  ;;  %v563_v17 = vcombine.low %v1014_v34, %v432_v47  ;;  %v545_v21 = vrot.slane %v538_v30, %v960_v27 }
 0x1a5   :  { %v506_v15 = vrot.slane %v474_v10, 1  ;;  %v562_v32 = vcombine.low %v554_v26, %v561_v23 }
 0x1a6   :  { %v505_v22 = vsel %vm26_vm0, %v503_v12, %v504_v13  ;;  %v570_v19 = vrot.slane %v563_v17, %v960_v27 }
 0x1a7   :  { %509 = vrot.lane.b32.xlu0 %v505_v22, %s873_s23  ;;  %v508_v25 = vsel %vm26_vm0, %v506_v15, %v507_v16 }
 0x1a8   :  { %513 = vrot.lane.b32.xlu1 %v508_v25, %s873_s23 }
 0x1ab   :  { %511 = vrot.lane.b32.xlu0 %v504_v13, %s873_s23 }
 0x1ac   :  { %575 = vrot.lane.b32.xlu1 %v562_v32, %s874_s27 }
 0x1af   :  { %573 = vrot.lane.b32.xlu0 %v545_v21, %s874_s27 }
 0x1b0   :  { %577 = vrot.lane.b32.xlu1 %v570_v19, %s874_s27  ;;  %v742_v19 = vcombine.high %v913_v1, %v913_v1 }
 0x1b3   :  { %515 = vrot.lane.b32.xlu0 %v507_v16, %s873_s23 }
 0x216   :  { %v572_v29 = vpop.permute.xlu1 %571 }
 0x219   :  { %v510_v31 = vpop.permute.xlu0 %509 }
 0x21a   :  { %v583_v33 = vsel %vm64_vm5, %v449_v6, %v510_v31  ;;  %v514_v35 = vpop.permute.xlu1 %513  ;;  %v743_v31 = vcombine.high %v908_v0, %v908_v0 }
 0x21b   :  { %v587_v34 = vsel %vm69_vm6, %v583_v33, %v572_v29  ;;  %v585_v27 = vsel %vm64_vm5, %v474_v10, %v514_v35  ;;  %v744_v29 = vcombine.high %v920_v4, %v920_v4  ;;  %v754_v33 = vrot.slane %v908_v0, 6 }
 0x21c   :  { %v595_v36 = vcombine.high %v587_v34, %v587_v34  ;;  %v751_v35 = vrot.slane %v742_v19, 6  ;;  %v813_v0 = vrot.slane %v920_v4, 10 }
 0x21d   :  { %v512_v37 = vpop.permute.xlu0 %511 }
 0x21e   :  { %v599_v38 = vcombine.low %v587_v34, %v595_v36  ;;  %v576_v39 = vpop.permute.xlu1 %575  ;;  %v584_v40 = vsel %vm64_vm5, %v457_v53, %v512_v37  ;;  %v745_v34 = vcombine.high %v925_v5, %v925_v5  ;;  %v761_v36 = vrot.slane %v744_v29, 6 }
 0x21f   :  { %v589_v42 = vsel %vm69_vm6, %v585_v27, %v576_v39  ;;  %v764_v37 = vrot.slane %v925_v5, 6  ;;  %v756_v27 = vrot.slane %v754_v33, 4 }
 0x220   :  { %840 = vmatmul.mubr.msk.f32.vlgmr.msra.gmra.mrb[0].mxu1 %vm205_vm7, %v599_v38  ;;  %v596_v46 = vcombine.high %v589_v42, %v589_v42  ;;  %v730_v38 = vsub.s32 2, %v957_v24 }
 0x221   :  { %v574_v41 = vpop.permute.xlu0 %573  ;;  %842 = vmatprep.mubr.msk.f32.mxu1 %vm878_vm9, %v879_v28 }
 0x222   :  { %v588_v43 = vsel %vm69_vm6, %v584_v40, %v574_v41  ;;  %v578_v47 = vpop.permute.xlu1 %577  ;;  %v757_v40 = vrot.slane %v743_v31, 6  ;;  %v812_v41 = vrot.slane %v913_v1, 10 }
 0x223   :  { %v600_v44 = vcombine.low %v588_v43, %v589_v42 }
 0x224   :  { %v752_v1 = vsel %vm1097_vm12, %v812_v41, %v751_v35 }
 0x225   :  { %843 = vmatmul.mubr.msk.f32.gmra.mrb[2].mxu1 %vm205_vm7, %v600_v44  ;;  %v516_v45 = vpop.permute.xlu0 %515  ;;  %v753_v44 = vrot.slane %v751_v35, 4 }
 0x226   :  { %v586_v48 = vsel %vm64_vm5, %v482_v63, %v516_v45  ;;  %845 = vmatprep.mubr.msk.f32.mxu1 %vm878_vm9, %v879_v28  ;;  %v763_v45 = vrot.slane %v761_v36, 4 }
 0x227   :  { %v590_v49 = vsel %vm69_vm6, %v586_v48, %v578_v47  ;;  %v767_v47 = vrot.slane %v745_v34, 6 }
 0x228   :  { %v601_v50 = vcombine.low %v596_v46, %v590_v49  ;;  %v766_v46 = vrot.slane %v764_v37, 4  ;;  %v758_v49 = vsel %vm1097_vm12, %v756_v27, %v757_v40 }
 0x22a   :  { %846 = vmatmul.mubr.msk.f32.gmra.mrb[4].mxu1 %vm205_vm7, %v601_v50  ;;  %v737_v50 = vsub.s32 3, %v957_v24  ;;  %v768_v24 = vsel %vm1097_vm12, %v766_v46, %v767_v47 }
 0x2f3   :  { %v1069_v51 = vpop.f32.mrb[0].mxu1 }
 0x2f4   :  { %v841_v52 = vpop.f32.mrb[1].mxu1  ;;  %v702_v53 = vmul.f32 %v1069_v51, %v1069_v51  ;;  %v691_v55 = vsel %vm64_vm5, %v1069_v51, 0.0 }
 0x2f6   :  { %v705_v61 = vsel %vm64_vm5, %v702_v53, 0.0 }
 0x2f8   :  { %v1073_v54 = vpop.f32.mrb[2].mxu1 }
 0x2f9   :  { %v692_v56 = vsel %vm64_vm5, %v1073_v54, 0.0  ;;  %v703_v57 = vmul.f32 %v1073_v54, %v1073_v54  ;;  %v844_v58 = vpop.f32.mrb[3].mxu1 }
 0x2fa   :  { %v693_v60 = vadd.f32 %v692_v56, %v691_v55  ;;  %v755_v56 = vsel %vm1097_vm12, %v753_v44, %v754_v33  ;;  %v765_v58 = vsel %vm1097_vm12, %v763_v45, %v764_v37 }
 0x2fb   :  { %v706_v62 = vsel %vm64_vm5, %v703_v57, 0.0  ;;  %v762_v57 = vsel %vm1097_vm12, %v813_v0, %v761_v36 }
 0x2fc   :  { %v707_v63 = vadd.f32 %v706_v62, %v705_v61  ;;  %v769_v62 = vcombine.low %v752_v1, %v755_v56 }
 0x2fd   :  { %v687_v2 = vpop.f32.mrb[4].mxu1 }
 0x2fe   :  { %v694_v3 = vsel %vm64_vm5, %v687_v2, 0.0  ;;  %v704_v6 = vmul.f32 %v687_v2, %v687_v2  ;;  %v847_v7 = vpop.f32.mrb[5].mxu1 }
 0x2ff   :  { %v695_v8 = vadd.f32 %v694_v3, %v693_v60 }
 0x300   :  { %v708_v9 = vsel %vm64_vm5, %v704_v6, 0.0 }
 0x301   :  { %v696_v10 = vrot.slane %v695_v8, 4  ;;  %v709_v11 = vadd.f32 %v708_v9, %v707_v63  ;;  %v771_v63 = vcombine.low %v765_v58, %v768_v24 }
 0x303   :  { %v697_v12 = vadd.f32 %v696_v10, %v695_v8  ;;  %v710_v13 = vrot.slane %v709_v11, 4 }
 0x305   :  { %v698_v14 = vrot.slane %v697_v12, 2  ;;  %v711_v15 = vadd.f32 %v710_v13, %v709_v11 }
 0x307   :  { %v699_v16 = vadd.f32 %v698_v14, %v697_v12  ;;  %v712_v18 = vrot.slane %v711_v15, 2 }
 0x309   :  { %v700_v20 = vrot.slane %v699_v16, 1  ;;  %v713_v22 = vadd.f32 %v712_v18, %v711_v15 }
 0x30b   :  { %v701_v23 = vadd.f32 %v700_v20, %v699_v16  ;;  %v714_v25 = vrot.slane %v713_v22, 1 }
 0x30d   :  { %v715_v26 = vadd.f32 %v714_v25, %v713_v22  ;;  %v716_v28 = vmul.f32 0.041666668, %v701_v23 }
 0x30f   :  { %v717_v30 = vmul.f32 0.041666668, %v715_v26  ;;  %v718_v32 = vmul.f32 %v716_v28, %v716_v28 }
 0x311   :  { %v719_v17 = vsub.f32 %v717_v30, %v718_v32 }
 0x313   :  { %v720_v21 = vadd.f32 1e-05, %v719_v17 }
 0x315   :  { %871 = vrsqrt.f32 %v720_v21 }
 0x31f   :  { %v872_v39 = vpop.eup %871 }
 0x320   :  { %v722_v43 = vmul.f32 %v872_v39, %v1004_v59 }
 0x322   :  { %v723_v5 = vmul.f32 %v722_v43, %v716_v28  ;;  %v731_v48 = vrot.slane %v722_v43, %v730_v38 }
 0x324   :  { %v725_v52 = vrot.slane %v723_v5, 7  ;;  %v732_v53 = vmul.f32 %v731_v48, %v1069_v51  ;;  %v733_v4 = vmul.f32 %v731_v48, %v1073_v54  ;;  %v734_v55 = vmul.f32 %v731_v48, %v687_v2 }
 0x325   :  { %v770_v51 = vcombine.low %v758_v49, %v762_v57 }
 0x326   :  { %v727_v60 = vsub.f32 %v1004_v59, %v725_v52 }
 0x328   :  { %v738_v61 = vrot.slane %v727_v60, %v737_v50 }
 0x32a   :  { %v739_v54 = vadd.f32 %v738_v61, %v732_v53  ;;  %v740_v2 = vadd.f32 %v738_v61, %v733_v4  ;;  %v741_v3 = vadd.f32 %v738_v61, %v734_v55 }
 0x32c   :  { %v775_v6 = vadd.f32 %v769_v62, %v739_v54  ;;  %v776_v7 = vadd.f32 %v770_v51, %v740_v2  ;;  %v777_v8 = vadd.f32 %v771_v63, %v741_v3 }
 0x32e   :  { %v778_v9 = vmul.f32 0.01, %v775_v6  ;;  %v779_v10 = vmul.f32 0.01, %v776_v7  ;;  %v780_v11 = vmul.f32 0.01, %v777_v8 }
 0x330   :  { %v781_v12 = vmax.f32 %v775_v6, %v778_v9  ;;  %v782_v13 = vmax.f32 %v776_v7, %v779_v10  ;;  %v783_v14 = vmax.f32 %v777_v8, %v780_v11 }
 0x332   :  { %v787_v15 = vcombine.high %v781_v12, %v781_v12  ;;  %v788_v16 = vcombine.high %v782_v13, %v782_v13  ;;  %v789_v18 = vcombine.high %v783_v14, %v783_v14  ;;  %796 = vst.msk [vmem:[%s1139_s4 + $0x8] sm:$0xf] %vm308_vm8, %v782_v13 }
 0x334   :  { %v791_v59 = vcombine.low %v781_v12, %v787_v15  ;;  %v792_v20 = vcombine.low %v788_v16, %v783_v14  ;;  %798 = vst.msk [vmem:[%s1139_s4 + $0x18] sm:$0xf] %vm308_vm8, %v789_v18 }
 0x336   :  { %795 = vst.msk [vmem:[%s1139_s4] sm:$0xff] %vm64_vm5, %v791_v59  ;;  %797 = vst.msk [vmem:[%s1139_s4 + $0x10] sm:$0xff] %vm64_vm5, %v792_v20 }

</bundles_post_ra>
